<compile_context>
chip_gen: v7x
topology: tpu7x:2x2x1
jax: 0.10.0
libtpu: 0.0.40
codegen_flags: <defaults>
</compile_context>

<pallas_src>
import functools

import jax
import jax.numpy as jnp
from jax.experimental import pallas as pl
from jax.experimental.pallas import tpu as pltpu

_EPS = 1e-5


def _round_up(n, m):
    return (n + m - 1) // m * m


# ------------------------------ fused kernel --------------------------------

def _res_fused_kernel(x_ref, mask_ref, vec_ref, w1_ref, w2_ref, wc_ref, o_ref,
                      *, img_w, cin_p, cmid_p, cout_p):
    x = x_ref[...]                                    # (Cin_p, L)
    v = vec_ref[...]                                  # (7, Cmax_p, 1)
    s0, t0 = v[0, :cin_p], v[1, :cin_p]               # bn0 scale / shift
    ss, ts = v[2, :cin_p], v[3, :cin_p]               # bn_skip scale / shift
    t1, t2 = v[4, :cmid_p], v[5, :cmid_p]             # bn1/bn2 shifts (+conv bias)
    b_out = v[6, :cout_p]                             # conv3 + skip conv biases

    # conv_block preact: BN0 -> ReLU, then 1x1 conv (BN1 scale folded into w1).
    xa = jnp.maximum(x * s0 + t0, 0.0)
    y1a = jnp.maximum(
        jnp.dot(w1_ref[...], xa, preferred_element_type=jnp.float32) + t1, 0.0)

    # 3x3 conv (stride 1, pad 1) as ONE im2col matmul: nine rolled + masked copies
    # of y1a stacked along sublanes, contracted against the (Cmid_p, 9*Cmid_p)
    # tap-major weight.  pltpu.roll runs on the XLU; masks reproduce zero padding
    # (and keep rolls from bleeding across images folded into the lane axis).
    lanes = y1a.shape[-1]
    masks = mask_ref[...]                             # (9, 1, L)
    taps = []
    for k in range(9):
        dy, dx = k // 3 - 1, k % 3 - 1
        d = dy * img_w + dx                           # lane offset of this tap
        if d == 0:
            taps.append(y1a)                          # center tap: no roll, no mask
        else:
            shifted = pltpu.roll(y1a, shift=(-d) % lanes, axis=1)
            taps.append(shifted * masks[k])
    im2col = jnp.concatenate(taps, axis=0)            # (9*Cmid_p, L)
    y2a = jnp.maximum(
        jnp.dot(w2_ref[...], im2col, preferred_element_type=jnp.float32) + t2, 0.0)

    # skip branch (BN -> ReLU) and the two trailing 1x1 convs fused into one dot:
    # out = [w3 | w_skip] @ [y2a ; xs] + (b3 + b_skip)
    xs = jnp.maximum(x * ss + ts, 0.0)
    z = jnp.concatenate([y2a, xs], axis=0)            # (Cmid_p + Cin_p, L)
    o_ref[...] = (
        jnp.dot(wc_ref[...], z, preferred_element_type=jnp.float32) + b_out)


# --------------------------- Res forward (glue) -----------------------------

def _bn_affine(bn):
    scale = bn["gamma"] / jnp.sqrt(bn["var"] + _EPS)
    shift = bn["beta"] - bn["mean"] * scale
    return scale, shift


def res_forward(x_nchw, p, *, grid_steps=None):
    """Res.forward: stride=1, type='preact', useConv=False, numIn != numOut."""
    N, Cin, H, W = x_nchw.shape
    HW = H * W

    # ---- fold BN (inference) + conv biases into per-channel scales / shifts ----
    s0, t0 = _bn_affine(p["bn0"])
    s1, t1 = _bn_affine(p["bn1"])
    s2, t2 = _bn_affine(p["bn2"])
    ss, ts = _bn_affine(p["bn_skip"])
    t1 = t1 + p["conv1_b"] * s1               # conv1 bias -> bn1 shift
    t2 = t2 + p["conv2_b"] * s2               # conv2 bias -> bn2 shift
    b_out = p["conv3_b"] + p["conv_skip_b"]   # trailing biases combined

    Cmid = p["conv1_w"].shape[0]
    Cout = p["conv3_w"].shape[0]

    # channel dims padded to sublane multiples -> all concats / dots 8-aligned
    Cin_p, Cmid_p, Cout_p = (_round_up(c, 8) for c in (Cin, Cmid, Cout))
    Cmax_p = max(Cin_p, Cmid_p, Cout_p)

    # 1x1 conv weight with BN1 scale folded in
    w1 = s1[:, None] * p["conv1_w"][:, :, 0, 0]                    # (Cmid, Cin)
    w1 = jnp.pad(w1, ((0, Cmid_p - Cmid), (0, Cin_p - Cin)))

    # 3x3 conv: (o,i,ky,kx) -> tap-major (Cmid_p, 9*Cmid_p), BN2 scale folded in
    w2 = jnp.transpose(p["conv2_w"], (2, 3, 0, 1)).reshape(9, Cmid, Cmid)
    w2 = jnp.pad(w2, ((0, 0), (0, Cmid_p - Cmid), (0, Cmid_p - Cmid)))
    s2p = jnp.pad(s2, (0, Cmid_p - Cmid))
    w2cat = s2p[:, None] * jnp.transpose(w2, (1, 0, 2)).reshape(Cmid_p, 9 * Cmid_p)

    # final 1x1 + skip 1x1 fused: [w3 | w_skip]
    w3 = jnp.pad(p["conv3_w"][:, :, 0, 0],
                 ((0, Cout_p - Cout), (0, Cmid_p - Cmid)))
    wsk = jnp.pad(p["conv_skip_w"][:, :, 0, 0],
                  ((0, Cout_p - Cout), (0, Cin_p - Cin)))
    wcat = jnp.concatenate([w3, wsk], axis=1)          # (Cout_p, Cmid_p + Cin_p)

    # nine tiny per-channel vectors packed into ONE (7, Cmax_p, 1) input
    def vrow(vv):
        return jnp.pad(vv.astype(jnp.float32), (0, Cmax_p - vv.shape[0]))
    vecs = jnp.stack([vrow(s0), vrow(t0), vrow(ss), vrow(ts),
                      vrow(t1), vrow(t2), vrow(b_out)])[:, :, None]

    # ---- activations: NCHW -> channels-in-sublanes, batch*spatial in lanes -----
    x2d = jnp.transpose(x_nchw.astype(jnp.float32),
                        (1, 0, 2, 3)).reshape(Cin, N * HW)
    x2d = jnp.pad(x2d, ((0, Cin_p - Cin), (0, 0)))

    # grid: two "parallel" steps feed both v7x TensorCores; each step processes
    # half the batch folded into its lane axis.  grid_steps=1 gives one big
    # lane-dense step (best on single-TC v5e/v6e).
    if grid_steps is None:
        grid_steps = 2 if (N % 2 == 0) else 1
    G = grid_steps
    assert N % G == 0, (N, G)
    Nb = N // G
    L = Nb * HW

    # zero-padding masks of the 3x3 conv, precomputed (batch-invariant)
    pos = jnp.arange(HW)
    hh, ww = pos // W, pos % W
    mrows = []
    for k in range(9):
        dy, dx = k // 3 - 1, k % 3 - 1
        mrows.append((hh + dy >= 0) & (hh + dy < H)
                     & (ww + dx >= 0) & (ww + dx < W))
    mask = jnp.stack(mrows).astype(jnp.float32)        # (9, HW)
    mask = jnp.tile(mask, (1, Nb)).reshape(9, 1, L)    # same mask for each image

    kernel = functools.partial(_res_fused_kernel, img_w=W,
                               cin_p=Cin_p, cmid_p=Cmid_p, cout_p=Cout_p)
    out2d = pl.pallas_call(
        kernel,
        out_shape=jax.ShapeDtypeStruct((Cout_p, N * HW), jnp.float32),
        grid=(G,),
        in_specs=[
            pl.BlockSpec((Cin_p, L), lambda g: (0, g)),                # x lane slice
            pl.BlockSpec((9, 1, L), lambda g: (0, 0, 0)),              # pad masks
            pl.BlockSpec((7, Cmax_p, 1), lambda g: (0, 0, 0)),         # packed vectors
            pl.BlockSpec((Cmid_p, Cin_p), lambda g: (0, 0)),           # w1 (scaled)
            pl.BlockSpec((Cmid_p, 9 * Cmid_p), lambda g: (0, 0)),      # im2col weight
            pl.BlockSpec((Cout_p, Cmid_p + Cin_p), lambda g: (0, 0)),  # [w3|w_skip]
        ],
        out_specs=pl.BlockSpec((Cout_p, L), lambda g: (0, g)),
        compiler_params=pltpu.CompilerParams(
            dimension_semantics=("parallel",)),
    )(x2d, mask, vecs, w1, w2cat, wcat)

    return out2d[:Cout].reshape(Cout, N, H, W).transpose(1, 0, 2, 3)


# --------------------------- pure-JAX reference -----------------------------

def ref_forward(x_nchw, p):
    x = jnp.transpose(x_nchw, (0, 2, 3, 1)).astype(jnp.float32)

    def bn(v, b):
        s, t = _bn_affine(b)
        return v * s + t

    def conv(v, w, b, stride=1, pad=0):
        wh = jnp.transpose(w, (2, 3, 1, 0))          # HWIO
        y = jax.lax.conv_general_dilated(
            v, wh, (stride, stride), [(pad, pad), (pad, pad)],
            dimension_numbers=("NHWC", "HWIO", "NHWC"))
        return y + b

    relu = lambda v: jnp.maximum(v, 0.0)

    x0 = relu(bn(x, p["bn0"]))
    y = conv(x0, p["conv1_w"], p["conv1_b"])
    y = relu(bn(y, p["bn1"]))
    y = conv(y, p["conv2_w"], p["conv2_b"], stride=1, pad=1)
    y = relu(bn(y, p["bn2"]))
    y = conv(y, p["conv3_w"], p["conv3_b"])

    xs = relu(bn(x, p["bn_skip"]))
    s = conv(xs, p["conv_skip_w"], p["conv_skip_b"])
    return jnp.transpose(y + s, (0, 3, 1, 2))


# ------------------------------- param init ---------------------------------

def make_params(key, numIn, numOut):
    Cmid = numOut // 2
    keys = jax.random.split(key, 32)
    k = iter(keys)

    def conv_p(ci, co, kh, kw):
        w = 0.1 * jax.random.normal(next(k), (co, ci, kh, kw), jnp.float32)
        b = 0.1 * jax.random.normal(next(k), (co,), jnp.float32)
        return w, b

    def bn_p(c):
        return {
            "gamma": 1.0 + 0.1 * jax.random.normal(next(k), (c,), jnp.float32),
            "beta": 0.1 * jax.random.normal(next(k), (c,), jnp.float32),
            "mean": 0.1 * jax.random.normal(next(k), (c,), jnp.float32),
            "var": 0.5 + jnp.abs(0.1 * jax.random.normal(next(k), (c,), jnp.float32)),
        }

    p = {}
    p["bn0"] = bn_p(numIn)
    p["conv1_w"], p["conv1_b"] = conv_p(numIn, Cmid, 1, 1)
    p["bn1"] = bn_p(Cmid)
    p["conv2_w"], p["conv2_b"] = conv_p(Cmid, Cmid, 3, 3)
    p["bn2"] = bn_p(Cmid)
    p["conv3_w"], p["conv3_b"] = conv_p(Cmid, numOut, 1, 1)
    p["bn_skip"] = bn_p(numIn)
    p["conv_skip_w"], p["conv_skip_b"] = conv_p(numIn, numOut, 1, 1)
    return p


# ----------------------------------- main ------------------------------------

if __name__ == "__main__":
    numIn, numOut, stride = 4, 8, 1   # type='preact', useConv=False
    N, H, W = 2, 16, 16

    key = jax.random.PRNGKey(0)
    kx, kp = jax.random.split(key)
    x = jax.random.normal(kx, (N, numIn, H, W), jnp.float32)   # NCHW, like PyTorch
    params = make_params(kp, numIn, numOut)

    out = jax.jit(res_forward)(x, params)
    out = jax.block_until_ready(out)

    ref = jax.block_until_ready(ref_forward(x, params))
    assert out.shape == (N, numOut, H, W), out.shape
    assert jnp.allclose(out, ref, rtol=2e-4, atol=2e-4), float(jnp.max(jnp.abs(out - ref)))

    print("KERNEL_OK")
</pallas_src>

<mosaic_0001>
module attributes {stable_mosaic.version = 11 : i64} {
  func.func @_res_fused_kernel(%arg0: i32, %arg1: memref<8x256xf32, #tpu.memory_space<vmem>>, %arg2: memref<9x1x256xf32, #tpu.memory_space<vmem>>, %arg3: memref<7x8x1xf32, #tpu.memory_space<vmem>>, %arg4: memref<8x8xf32, #tpu.memory_space<vmem>>, %arg5: memref<8x72xf32, #tpu.memory_space<vmem>>, %arg6: memref<8x16xf32, #tpu.memory_space<vmem>>, %arg7: memref<8x256xf32, #tpu.memory_space<vmem>>) attributes {dimension_semantics = [#tpu.dimension_semantics<parallel>], iteration_bounds = array<i64: 2>, scalar_prefetch = 0 : i64, scratch_operands = 0 : i64, tpu.core_type = #tpu.core_type<tc>, window_params = [{transform_indices = @transform_0, window_bounds = array<i64: 8, 256>}, {pipeline_mode = #tpu.pipeline_mode<synchronous>, transform_indices = @transform_1, window_bounds = array<i64: 9, 1, 256>}, {pipeline_mode = #tpu.pipeline_mode<synchronous>, transform_indices = @transform_2, window_bounds = array<i64: 7, 8, 1>}, {pipeline_mode = #tpu.pipeline_mode<synchronous>, transform_indices = @transform_3, window_bounds = array<i64: 8, 8>}, {pipeline_mode = #tpu.pipeline_mode<synchronous>, transform_indices = @transform_4, window_bounds = array<i64: 8, 72>}, {pipeline_mode = #tpu.pipeline_mode<synchronous>, transform_indices = @transform_5, window_bounds = array<i64: 8, 16>}, {transform_indices = @transform_6, window_bounds = array<i64: 8, 256>}]} {
    %c0 = arith.constant 0 : index
    %c0_0 = arith.constant 0 : index
    %0 = vector.load %arg1[%c0, %c0_0] : memref<8x256xf32, #tpu.memory_space<vmem>>, vector<8x256xf32>
    %c0_1 = arith.constant 0 : index
    %c0_2 = arith.constant 0 : index
    %c0_3 = arith.constant 0 : index
    %1 = vector.load %arg3[%c0_1, %c0_2, %c0_3] : memref<7x8x1xf32, #tpu.memory_space<vmem>>, vector<7x8x1xf32>
    %2 = vector.extract_strided_slice %1 {offsets = [0, 0, 0], sizes = [1, 8, 1], strides = [1, 1, 1]} : vector<7x8x1xf32> to vector<1x8x1xf32>
    %3 = vector.shape_cast %2 : vector<1x8x1xf32> to vector<8x1xf32>
    %4 = vector.extract_strided_slice %1 {offsets = [1, 0, 0], sizes = [1, 8, 1], strides = [1, 1, 1]} : vector<7x8x1xf32> to vector<1x8x1xf32>
    %5 = vector.shape_cast %4 : vector<1x8x1xf32> to vector<8x1xf32>
    %6 = vector.extract_strided_slice %1 {offsets = [2, 0, 0], sizes = [1, 8, 1], strides = [1, 1, 1]} : vector<7x8x1xf32> to vector<1x8x1xf32>
    %7 = vector.shape_cast %6 : vector<1x8x1xf32> to vector<8x1xf32>
    %8 = vector.extract_strided_slice %1 {offsets = [3, 0, 0], sizes = [1, 8, 1], strides = [1, 1, 1]} : vector<7x8x1xf32> to vector<1x8x1xf32>
    %9 = vector.shape_cast %8 : vector<1x8x1xf32> to vector<8x1xf32>
    %10 = vector.extract_strided_slice %1 {offsets = [4, 0, 0], sizes = [1, 8, 1], strides = [1, 1, 1]} : vector<7x8x1xf32> to vector<1x8x1xf32>
    %11 = vector.shape_cast %10 : vector<1x8x1xf32> to vector<8x1xf32>
    %12 = vector.extract_strided_slice %1 {offsets = [5, 0, 0], sizes = [1, 8, 1], strides = [1, 1, 1]} : vector<7x8x1xf32> to vector<1x8x1xf32>
    %13 = vector.shape_cast %12 : vector<1x8x1xf32> to vector<8x1xf32>
    %14 = vector.extract_strided_slice %1 {offsets = [6, 0, 0], sizes = [1, 8, 1], strides = [1, 1, 1]} : vector<7x8x1xf32> to vector<1x8x1xf32>
    %15 = vector.shape_cast %14 : vector<1x8x1xf32> to vector<8x1xf32>
    %16 = vector.broadcast %3 : vector<8x1xf32> to vector<8x256xf32>
    %17 = arith.mulf %0, %16 : vector<8x256xf32>
    %18 = vector.broadcast %5 : vector<8x1xf32> to vector<8x256xf32>
    %19 = arith.addf %17, %18 : vector<8x256xf32>
    %cst = arith.constant 0.000000e+00 : f32
    %20 = vector.broadcast %cst : f32 to vector<8x256xf32>
    %21 = arith.maximumf %19, %20 : vector<8x256xf32>
    %c0_4 = arith.constant 0 : index
    %c0_5 = arith.constant 0 : index
    %22 = vector.load %arg4[%c0_4, %c0_5] : memref<8x8xf32, #tpu.memory_space<vmem>>, vector<8x8xf32>
    %cst_6 = arith.constant dense<0.000000e+00> : vector<8x256xf32>
    %23 = tpu.matmul %22, %21, %cst_6 {dimension_numbers = #tpu.dot_dimension_numbers<[1], [0], [0], [1], [0, 0, 1, 1], [], []>} : vector<8x8xf32>, vector<8x256xf32>, vector<8x256xf32> -> vector<8x256xf32>
    %24 = vector.broadcast %11 : vector<8x1xf32> to vector<8x256xf32>
    %25 = arith.addf %23, %24 : vector<8x256xf32>
    %cst_7 = arith.constant 0.000000e+00 : f32
    %26 = vector.broadcast %cst_7 : f32 to vector<8x256xf32>
    %27 = arith.maximumf %25, %26 : vector<8x256xf32>
    %c0_8 = arith.constant 0 : index
    %c0_9 = arith.constant 0 : index
    %c0_10 = arith.constant 0 : index
    %28 = vector.load %arg2[%c0_8, %c0_9, %c0_10] : memref<9x1x256xf32, #tpu.memory_space<vmem>>, vector<9x1x256xf32>
    %c17_i32 = arith.constant 17 : i32
    %29 = tpu.dynamic_rotate %27 by %c17_i32 dim 1 : vector<8x256xf32>, i32 -> vector<8x256xf32>
    %30 = vector.extract_strided_slice %28 {offsets = [0, 0, 0], sizes = [1, 1, 256], strides = [1, 1, 1]} : vector<9x1x256xf32> to vector<1x1x256xf32>
    %31 = vector.shape_cast %30 : vector<1x1x256xf32> to vector<1x256xf32>
    %32 = vector.broadcast %31 : vector<1x256xf32> to vector<8x256xf32>
    %33 = arith.mulf %29, %32 : vector<8x256xf32>
    %c16_i32 = arith.constant 16 : i32
    %34 = tpu.dynamic_rotate %27 by %c16_i32 dim 1 : vector<8x256xf32>, i32 -> vector<8x256xf32>
    %35 = vector.extract_strided_slice %28 {offsets = [1, 0, 0], sizes = [1, 1, 256], strides = [1, 1, 1]} : vector<9x1x256xf32> to vector<1x1x256xf32>
    %36 = vector.shape_cast %35 : vector<1x1x256xf32> to vector<1x256xf32>
    %37 = vector.broadcast %36 : vector<1x256xf32> to vector<8x256xf32>
    %38 = arith.mulf %34, %37 : vector<8x256xf32>
    %c15_i32 = arith.constant 15 : i32
    %39 = tpu.dynamic_rotate %27 by %c15_i32 dim 1 : vector<8x256xf32>, i32 -> vector<8x256xf32>
    %40 = vector.extract_strided_slice %28 {offsets = [2, 0, 0], sizes = [1, 1, 256], strides = [1, 1, 1]} : vector<9x1x256xf32> to vector<1x1x256xf32>
    %41 = vector.shape_cast %40 : vector<1x1x256xf32> to vector<1x256xf32>
    %42 = vector.broadcast %41 : vector<1x256xf32> to vector<8x256xf32>
    %43 = arith.mulf %39, %42 : vector<8x256xf32>
    %c1_i32 = arith.constant 1 : i32
    %44 = tpu.dynamic_rotate %27 by %c1_i32 dim 1 : vector<8x256xf32>, i32 -> vector<8x256xf32>
    %45 = vector.extract_strided_slice %28 {offsets = [3, 0, 0], sizes = [1, 1, 256], strides = [1, 1, 1]} : vector<9x1x256xf32> to vector<1x1x256xf32>
    %46 = vector.shape_cast %45 : vector<1x1x256xf32> to vector<1x256xf32>
    %47 = vector.broadcast %46 : vector<1x256xf32> to vector<8x256xf32>
    %48 = arith.mulf %44, %47 : vector<8x256xf32>
    %c255_i32 = arith.constant 255 : i32
    %49 = tpu.dynamic_rotate %27 by %c255_i32 dim 1 : vector<8x256xf32>, i32 -> vector<8x256xf32>
    %50 = vector.extract_strided_slice %28 {offsets = [5, 0, 0], sizes = [1, 1, 256], strides = [1, 1, 1]} : vector<9x1x256xf32> to vector<1x1x256xf32>
    %51 = vector.shape_cast %50 : vector<1x1x256xf32> to vector<1x256xf32>
    %52 = vector.broadcast %51 : vector<1x256xf32> to vector<8x256xf32>
    %53 = arith.mulf %49, %52 : vector<8x256xf32>
    %c241_i32 = arith.constant 241 : i32
    %54 = tpu.dynamic_rotate %27 by %c241_i32 dim 1 : vector<8x256xf32>, i32 -> vector<8x256xf32>
    %55 = vector.extract_strided_slice %28 {offsets = [6, 0, 0], sizes = [1, 1, 256], strides = [1, 1, 1]} : vector<9x1x256xf32> to vector<1x1x256xf32>
    %56 = vector.shape_cast %55 : vector<1x1x256xf32> to vector<1x256xf32>
    %57 = vector.broadcast %56 : vector<1x256xf32> to vector<8x256xf32>
    %58 = arith.mulf %54, %57 : vector<8x256xf32>
    %c240_i32 = arith.constant 240 : i32
    %59 = tpu.dynamic_rotate %27 by %c240_i32 dim 1 : vector<8x256xf32>, i32 -> vector<8x256xf32>
    %60 = vector.extract_strided_slice %28 {offsets = [7, 0, 0], sizes = [1, 1, 256], strides = [1, 1, 1]} : vector<9x1x256xf32> to vector<1x1x256xf32>
    %61 = vector.shape_cast %60 : vector<1x1x256xf32> to vector<1x256xf32>
    %62 = vector.broadcast %61 : vector<1x256xf32> to vector<8x256xf32>
    %63 = arith.mulf %59, %62 : vector<8x256xf32>
    %c239_i32 = arith.constant 239 : i32
    %64 = tpu.dynamic_rotate %27 by %c239_i32 dim 1 : vector<8x256xf32>, i32 -> vector<8x256xf32>
    %65 = vector.extract_strided_slice %28 {offsets = [8, 0, 0], sizes = [1, 1, 256], strides = [1, 1, 1]} : vector<9x1x256xf32> to vector<1x1x256xf32>
    %66 = vector.shape_cast %65 : vector<1x1x256xf32> to vector<1x256xf32>
    %67 = vector.broadcast %66 : vector<1x256xf32> to vector<8x256xf32>
    %68 = arith.mulf %64, %67 : vector<8x256xf32>
    %69 = tpu.concatenate %33, %38, %43, %48, %27, %53, %58, %63, %68 in 0 : vector<8x256xf32>, vector<8x256xf32>, vector<8x256xf32>, vector<8x256xf32>, vector<8x256xf32>, vector<8x256xf32>, vector<8x256xf32>, vector<8x256xf32>, vector<8x256xf32> -> vector<72x256xf32>
    %c0_11 = arith.constant 0 : index
    %c0_12 = arith.constant 0 : index
    %70 = vector.load %arg5[%c0_11, %c0_12] : memref<8x72xf32, #tpu.memory_space<vmem>>, vector<8x72xf32>
    %cst_13 = arith.constant dense<0.000000e+00> : vector<8x256xf32>
    %71 = tpu.matmul %70, %69, %cst_13 {dimension_numbers = #tpu.dot_dimension_numbers<[1], [0], [0], [1], [0, 0, 1, 1], [], []>} : vector<8x72xf32>, vector<72x256xf32>, vector<8x256xf32> -> vector<8x256xf32>
    %72 = vector.broadcast %13 : vector<8x1xf32> to vector<8x256xf32>
    %73 = arith.addf %71, %72 : vector<8x256xf32>
    %cst_14 = arith.constant 0.000000e+00 : f32
    %74 = vector.broadcast %cst_14 : f32 to vector<8x256xf32>
    %75 = arith.maximumf %73, %74 : vector<8x256xf32>
    %76 = vector.broadcast %7 : vector<8x1xf32> to vector<8x256xf32>
    %77 = arith.mulf %0, %76 : vector<8x256xf32>
    %78 = vector.broadcast %9 : vector<8x1xf32> to vector<8x256xf32>
    %79 = arith.addf %77, %78 : vector<8x256xf32>
    %cst_15 = arith.constant 0.000000e+00 : f32
    %80 = vector.broadcast %cst_15 : f32 to vector<8x256xf32>
    %81 = arith.maximumf %79, %80 : vector<8x256xf32>
    %82 = tpu.concatenate %75, %81 in 0 : vector<8x256xf32>, vector<8x256xf32> -> vector<16x256xf32>
    %c0_16 = arith.constant 0 : index
    %c0_17 = arith.constant 0 : index
    %83 = vector.load %arg6[%c0_16, %c0_17] : memref<8x16xf32, #tpu.memory_space<vmem>>, vector<8x16xf32>
    %cst_18 = arith.constant dense<0.000000e+00> : vector<8x256xf32>
    %84 = tpu.matmul %83, %82, %cst_18 {dimension_numbers = #tpu.dot_dimension_numbers<[1], [0], [0], [1], [0, 0, 1, 1], [], []>} : vector<8x16xf32>, vector<16x256xf32>, vector<8x256xf32> -> vector<8x256xf32>
    %85 = vector.broadcast %15 : vector<8x1xf32> to vector<8x256xf32>
    %86 = arith.addf %84, %85 : vector<8x256xf32>
    %c0_19 = arith.constant 0 : index
    %c0_20 = arith.constant 0 : index
    %87 = vector.load %arg7[%c0_19, %c0_20] : memref<8x256xf32, #tpu.memory_space<vmem>>, vector<8x256xf32>
    tpu.vector_store %arg7[%c0_19, %c0_20], %86 {strides = array<i32>} : memref<8x256xf32, #tpu.memory_space<vmem>>, vector<8x256xf32>,
    return
  }
  func.func @transform_0(%arg0: i32) -> (i32, i32) {
    %c0_i32 = arith.constant 0 : i32
    %c0_i32_0 = arith.constant 0 : i32
    return %c0_i32, %arg0 : i32, i32
  }
  func.func @transform_1(%arg0: i32) -> (i32, i32, i32) {
    %c0_i32 = arith.constant 0 : i32
    %c0_i32_0 = arith.constant 0 : i32
    %c0_i32_1 = arith.constant 0 : i32
    %c0_i32_2 = arith.constant 0 : i32
    return %c0_i32, %c0_i32_0, %c0_i32_1 : i32, i32, i32
  }
  func.func @transform_2(%arg0: i32) -> (i32, i32, i32) {
    %c0_i32 = arith.constant 0 : i32
    %c0_i32_0 = arith.constant 0 : i32
    %c0_i32_1 = arith.constant 0 : i32
    %c0_i32_2 = arith.constant 0 : i32
    return %c0_i32, %c0_i32_0, %c0_i32_1 : i32, i32, i32
  }
  func.func @transform_3(%arg0: i32) -> (i32, i32) {
    %c0_i32 = arith.constant 0 : i32
    %c0_i32_0 = arith.constant 0 : i32
    %c0_i32_1 = arith.constant 0 : i32
    return %c0_i32, %c0_i32_0 : i32, i32
  }
  func.func @transform_4(%arg0: i32) -> (i32, i32) {
    %c0_i32 = arith.constant 0 : i32
    %c0_i32_0 = arith.constant 0 : i32
    %c0_i32_1 = arith.constant 0 : i32
    return %c0_i32, %c0_i32_0 : i32, i32
  }
  func.func @transform_5(%arg0: i32) -> (i32, i32) {
    %c0_i32 = arith.constant 0 : i32
    %c0_i32_0 = arith.constant 0 : i32
    %c0_i32_1 = arith.constant 0 : i32
    return %c0_i32, %c0_i32_0 : i32, i32
  }
  func.func @transform_6(%arg0: i32) -> (i32, i32) {
    %c0_i32 = arith.constant 0 : i32
    %c0_i32_0 = arith.constant 0 : i32
    return %c0_i32, %arg0 : i32, i32
  }
}

</mosaic_0001>

<bundles_post_ra>
// kernel: res_forward.1
= control target key start
LH: loop header
LB: loop body
LE: loop exit
PB: predicated region body
PF: predicated region fallthrough
CT: control target
= control target key end

     0   :  { %s878_s21 = smov 0   ;;  %s1016_s0 = inlined_call_operand.vmem [shape: f32[8,512], index: 0, kind: input, shape index: {}]   ;;  %s1017_s1 = inlined_call_operand.vmem [shape: f32[9,1,256], index: 1, kind: input, shape index: {}]   ;;  %s1018_s2 = inlined_call_operand.vmem [shape: f32[7,8,1], index: 2, kind: input, shape index: {}]   ;;  %s1019_s3 = inlined_call_operand.vmem [shape: f32[8,8], index: 3, kind: input, shape index: {}]   ;;  %s1020_s4 = inlined_call_operand.vmem [shape: f32[8,72], index: 4, kind: input, shape index: {}]   ;;  %s1021_s5 = inlined_call_operand.vmem [shape: f32[8,16], index: 5, kind: input, shape index: {}]   ;;  %s1022_s6 = inlined_call_operand.vmem [shape: f32[8,512], index: 6, kind: output, shape index: {}]  }
   0x1 LB: > { %s771_s22 = sadd.s32 4294967295, %s831_s21   ;;  %p775_p0 = scmp.ge.s32.totalorder %s831_s21, 1  ;;  %s831_s21 = sphi %s878_s21, %s16_s21  }
   0x2   : > { %p213_p1 = scmp.lt.s32.totalorder %s831_s21, 3 }
   0x4   : > { %p214_p2 = pnand %p775_p0, %p213_p1 }
   0x5   : > { %v257_v0 = vld [vmem:[%s1018_s2] sm:$0xff] (!%p214_p2)  ;;  %v833_v1 = vmov (!%p214_p2), 0   ;;  %v258_v2 = vld [vmem:[%s1018_s2 + $0x8] sm:$0xff] (!%p214_p2)  ;;  %v834_v3 = vmov (!%p214_p2), 0.0   ;;  %s776_s29 = sshll.u32 (!%p214_p2), %s771_s22, 1  ;;  %vm286_vm0 = vcmask (!%p214_p2), 64512   ;;  %v375_v27 = vlaneseq (!%p214_p2) }
   0x6   : > { %217 = sbr.rel (%p214_p2) target bundleno = 951 (0x3b7), region = 44  ;;  %823 = vset.pattern.permute.xlu0 (!%p214_p2), %v833_v1  ;;  %824 = vset.pattern.permute.xlu1 (!%p214_p2), %v833_v1  ;;  %v261_v4 = vld [vmem:[%s1018_s2 + $0x20] sm:$0xff] (!%p214_p2)  ;;  %p244_p3 = scmp.lt.s32.totalorder (!%p214_p2), %s776_s29, 3  ;;  %v259_v23 = vld [vmem:[%s1018_s2 + $0x10] sm:$0xff] (!%p214_p2)  ;;  %v262_v24 = vld [vmem:[%s1018_s2 + $0x28] sm:$0xff] (!%p214_p2)  ;;  %vm539_vm9 = vcmask (!%p214_p2), 588800  }
   0x7   : > { %266 = vperm.xlu0 (!%p214_p2), %823, %v257_v0   ;;  %354 = vmatprep.mubr.f32.mxu0 (!%p214_p2), %v834_v3  ;;  %v280_v15 = vld [vmem:[%s1019_s3] sm:$0xff] (!%p214_p2)  ;;  %s835_s12 = smov (!%p214_p2), 17   ;;  %s836_s13 = smov (!%p214_p2), 16   ;;  %v260_v25 = vld [vmem:[%s1018_s2 + $0x18] sm:$0xff] (!%p214_p2)  ;;  %v263_v26 = vld [vmem:[%s1018_s2 + $0x30] sm:$0xff] (!%p214_p2)  ;;  %v382_v28 = vshrl.u32 (!%p214_p2), %v375_v27, 7 }
   0x8   : > { %607 = vmatprep.mubr.f32.mxu1 (!%p214_p2), %v834_v3  ;;  %283 = vperm.xlu1 (!%p214_p2), %824, %v261_v4   ;;  %s837_s14 = smov (!%p214_p2), 15   ;;  %s838_s15 = smov (!%p214_p2), 1   ;;  %v944_v29 = vand.u32 (!%p214_p2), 127, %v375_v27  ;;  %v363_v31 = vld [vmem:[%s1017_s1] sm:$0x3] (!%p214_p2)  ;;  %vm638_vm10 = vcmask (!%p214_p2), 130048  }
   0x9   : > { %s839_s16 = smov (!%p214_p2), 127   ;;  %s840_s17 = smov (!%p214_p2), 113   ;;  %v946_v30 = vsub.s32 (!%p214_p2), 0, %v382_v28  ;;  %v951_v32 = vsub.s32 (!%p214_p2), 1, %v382_v28  ;;  %v364_v34 = vld [vmem:[%s1017_s1 + $0x2] sm:$0x3] (!%p214_p2) }
   0xa   : > { %s841_s18 = smov (!%p214_p2), 112   ;;  %s842_s19 = smov (!%p214_p2), 111   ;;  %vm377_vm1 = vcmp.lt.s32.totalorder (!%p214_p2), %v944_v29, 17  ;;  %vm397_vm2 = vcmp.lt.s32.totalorder (!%p214_p2), %v944_v29, 16  ;;  %v365_v48 = vld [vmem:[%s1017_s1 + $0x4] sm:$0x3] (!%p214_p2) }
   0xb   : > { %273 = vperm.xlu0 (!%p214_p2), %823, %v258_v2   ;;  %v384_v36 = vrot.slane (!%p214_p2), %v363_v31, %v946_v30  ;;  %v404_v37 = vrot.slane (!%p214_p2), %v364_v34, %v946_v30  ;;  %v388_v38 = vrot.slane (!%p214_p2), %v363_v31, %v951_v32  ;;  %v408_v39 = vrot.slane (!%p214_p2), %v364_v34, %v951_v32  ;;  %v366_v52 = vld [vmem:[%s1017_s1 + $0x6] sm:$0x3] (!%p214_p2)  ;;  %v367_v60 = vld [vmem:[%s1017_s1 + $0xa] sm:$0x3] (!%p214_p2)  ;;  %v370_v34 = vld [vmem:[%s1017_s1 + $0x10] sm:$0x3] (!%p214_p2) }
   0xc   : > { %vm417_vm3 = vcmp.lt.s32.totalorder (!%p214_p2), %v944_v29, 15  ;;  %v424_v56 = vrot.slane (!%p214_p2), %v365_v48, %v946_v30  ;;  %v428_v57 = vrot.slane (!%p214_p2), %v365_v48, %v951_v32  ;;  %vm437_vm4 = vcmp.lt.s32.totalorder (!%p214_p2), %v944_v29, 1 }
   0xd   : > { %s1024_s29 = smov (!%p244_p3, %s776_s29), 3  ;;  %v444_v58 = vrot.slane %v366_v52, %v946_v30  ;;  %v448_v59 = vrot.slane %v366_v52, %v951_v32  ;;  %vm457_vm5 = vcmp.lt.s32.totalorder %v944_v29, 127  ;;  %v468_v4 = vrot.slane %v367_v60, %v951_v32 }
   0xe   : > { %s777_s30 = sshll.u32 %s1024_s29, 3  ;;  %vm477_vm6 = vcmp.lt.s32.totalorder %v944_v29, 113  ;;  %vm497_vm7 = vcmp.lt.s32.totalorder %v944_v29, 112  ;;  %vm517_vm8 = vcmp.lt.s32.totalorder %v944_v29, 111  ;;  %v524_v48 = vrot.slane %v370_v34, %v946_v30  ;;  %v533_v29 = vld [vmem:[%s1020_s4] sm:$0xff] }
   0xf   : > { %s247_s9 = scalar_lea.vmem %s1016_s0, %s777_s30  ;;  %s253_s8 = scalar_lea.vmem %s1022_s6, %s777_s30 }
  0x10   : > { %v903_v6 = vld [vmem:[%s247_s9] sm:$0xff]  ;;  %v905_v7 = vld [vmem:[%s247_s9 + $0x8] sm:$0xff] }
  0x86   : > { %v267_v5 = vpop.permute.xlu0 %266 }
  0x87   : > { %v269_v8 = vmul.f32 %v267_v5, %v903_v6  ;;  %v270_v9 = vmul.f32 %v267_v5, %v905_v7  ;;  %v284_v16 = vpop.permute.xlu1 %283 }
  0x8a   : > { %v274_v10 = vpop.permute.xlu0 %273 }
  0x8b   : > { %v276_v11 = vadd.f32 %v274_v10, %v269_v8  ;;  %v277_v12 = vadd.f32 %v274_v10, %v270_v9 }
  0x8d   : > { %v279_v13 = vmax.f32 %v277_v12, 0.0  ;;  %v278_v14 = vmax.f32 %v276_v11, 0.0 }
  0x8f   : > { %290 = vmatprep.subr.mxu0 %v279_v13 }
  0x90   : > { %291 = vmatpush1.msra.mxu0 %v278_v14 }
  0x91   : > { %780 = vmatmul.mubr.msk.f32.vlgmr.msra.gmra.mrb[0].mxu0 %vm286_vm0, %v280_v15 }
  0x92   : > { %706 = vmatprep.mubr.f32.mxu0 %v834_v3  ;;  %v464_v3 = vrot.slane %v367_v60, %v946_v30 }
 0x164   : > { %v356_v17 = vpop.f32.mrb[0].mxu0 }
 0x165   : > { %v357_v18 = vadd.f32 %v356_v17, %v284_v16  ;;  %v358_v19 = vpop.f32.mrb[1].mxu0 }
 0x166   : > { %v359_v20 = vadd.f32 %v358_v19, %v284_v16  ;;  %v368_v19 = vld [vmem:[%s1017_s1 + $0xc] sm:$0x3] }
 0x167   : > { %v912_v21 = vmax.f32 %v357_v18, 0.0  ;;  %v484_v27 = vrot.slane %v368_v19, %v946_v30  ;;  %v488_v28 = vrot.slane %v368_v19, %v951_v32 }
 0x168   : > { %v914_v22 = vmax.f32 %v359_v20, 0.0 }
 0x169   : > { %371 = vrot.lane.b32.xlu1 %v912_v21, %s835_s12 }
 0x16a   : > { %373 = vrot.lane.b32.xlu0 %v914_v22, %s835_s12 }
 0x16d   : > { %393 = vrot.lane.b32.xlu1 %v912_v21, %s836_s13 }
 0x16e   : > { %395 = vrot.lane.b32.xlu0 %v914_v22, %s836_s13 }
 0x171   : > { %413 = vrot.lane.b32.xlu1 %v912_v21, %s837_s14 }
 0x172   : > { %415 = vrot.lane.b32.xlu0 %v914_v22, %s837_s14 }
 0x175   : > { %433 = vrot.lane.b32.xlu1 %v912_v21, %s838_s15 }
 0x176   : > { %435 = vrot.lane.b32.xlu0 %v914_v22, %s838_s15 }
 0x179   : > { %453 = vrot.lane.b32.xlu1 %v912_v21, %s839_s16 }
 0x17a   : > { %455 = vrot.lane.b32.xlu0 %v914_v22, %s839_s16 }
 0x17d   : > { %473 = vrot.lane.b32.xlu1 %v912_v21, %s840_s17 }
 0x17e   : > { %475 = vrot.lane.b32.xlu0 %v914_v22, %s840_s17 }
 0x181   : > { %493 = vrot.lane.b32.xlu1 %v912_v21, %s841_s18 }
 0x182   : > { %495 = vrot.lane.b32.xlu0 %v914_v22, %s841_s18 }
 0x185   : > { %513 = vrot.lane.b32.xlu1 %v912_v21, %s842_s19 }
 0x186   : > { %515 = vrot.lane.b32.xlu0 %v914_v22, %s842_s19 }
 0x189   : > { %618 = vperm.xlu1 %824, %v259_v23   ;;  %v369_v23 = vld [vmem:[%s1017_s1 + $0xe] sm:$0x3] }
 0x18a   : > { %536 = vperm.xlu0 %823, %v262_v24   ;;  %v504_v31 = vrot.slane %v369_v23, %v946_v30 }
 0x18d   : > { %625 = vperm.xlu1 %824, %v260_v25  }
 0x18e   : > { %635 = vperm.xlu0 %823, %v263_v26  }
 0x1db   : > { %v372_v33 = vpop.permute.xlu1 %371 }
 0x1dc   : > { %v374_v35 = vpop.permute.xlu0 %373 }
 0x1dd   : > { %v378_v40 = vsel %vm377_vm1, %v372_v33, %v374_v35  ;;  %v379_v41 = vsel %vm377_vm1, %v374_v35, %v372_v33  ;;  %v508_v33 = vrot.slane %v369_v23, %v951_v32 }
 0x1de   : > { %v391_v46 = vmul.f32 %v384_v36, %v379_v41  ;;  %v392_v49 = vmul.f32 %v388_v38, %v378_v40 }
 0x1df   : > { %v394_v42 = vpop.permute.xlu1 %393 }
 0x1e0   : > { %v396_v43 = vpop.permute.xlu0 %395 }
 0x1e1   : > { %v398_v44 = vsel %vm397_vm2, %v394_v42, %v396_v43  ;;  %v399_v45 = vsel %vm397_vm2, %v396_v43, %v394_v42 }
 0x1e2   : > { %v411_v47 = vmul.f32 %v404_v37, %v399_v45  ;;  %v412_v50 = vmul.f32 %v408_v39, %v398_v44  ;;  %v528_v39 = vrot.slane %v370_v34, %v951_v32 }
 0x1e3   : > { %v414_v51 = vpop.permute.xlu1 %413 }
 0x1e4   : > { %v416_v53 = vpop.permute.xlu0 %415  ;;  %v785_v54 = vpack.c.bf16 %v412_v50, %v392_v49  ;;  %v787_v55 = vpack.c.bf16 %v411_v47, %v391_v46 }
 0x1e5   : > { %v418_v61 = vsel %vm417_vm3, %v414_v51, %v416_v53  ;;  %v419_v62 = vsel %vm417_vm3, %v416_v53, %v414_v51 }
 0x1e6   : > { %786 = vmatprep.subr.bf16.mxu1 %v785_v54  ;;  %v431_v5 = vmul.f32 %v424_v56, %v419_v62  ;;  %v432_v8 = vmul.f32 %v428_v57, %v418_v61 }
 0x1e7   : > { %788 = vmatpush1.bf16.msra.mxu1 %v787_v55  ;;  %v434_v63 = vpop.permute.xlu1 %433 }
 0x1e8   : > { %v436_v0 = vpop.permute.xlu0 %435 }
 0x1e9   : > { %v438_v1 = vsel %vm437_vm4, %v434_v63, %v436_v0  ;;  %v439_v2 = vsel %vm437_vm4, %v436_v0, %v434_v63 }
 0x1ea   : > { %v451_v9 = vmul.f32 %v444_v58, %v439_v2  ;;  %v452_v10 = vmul.f32 %v448_v59, %v438_v1 }
 0x1eb   : > { %v454_v11 = vpop.permute.xlu1 %453 }
 0x1ec   : > { %v456_v12 = vpop.permute.xlu0 %455  ;;  %v789_v13 = vpack.c.bf16 %v452_v10, %v432_v8  ;;  %v791_v14 = vpack.c.bf16 %v451_v9, %v431_v5 }
 0x1ed   : > { %v458_v15 = vsel %vm457_vm5, %v454_v11, %v456_v12  ;;  %v459_v16 = vsel %vm457_vm5, %v456_v12, %v454_v11 }
 0x1ee   : > { %v471_v17 = vmul.f32 %v464_v3, %v458_v15  ;;  %v472_v18 = vmul.f32 %v468_v4, %v459_v16  ;;  %790 = vmatprep.subr.bf16.mxu1 %v789_v13 }
 0x1ef   : > { %792 = vmatpush1.bf16.msra.mxu1 %v791_v14  ;;  %v474_v20 = vpop.permute.xlu1 %473 }
 0x1f0   : > { %v476_v24 = vpop.permute.xlu0 %475  ;;  %v793_v25 = vpack.c.bf16 %v472_v18, %v914_v22  ;;  %v795_v26 = vpack.c.bf16 %v471_v17, %v912_v21 }
 0x1f1   : > { %v478_v35 = vsel %vm477_vm6, %v474_v20, %v476_v24  ;;  %v479_v36 = vsel %vm477_vm6, %v476_v24, %v474_v20 }
 0x1f2   : > { %794 = vmatprep.subr.bf16.mxu1 %v793_v25  ;;  %v491_v40 = vmul.f32 %v484_v27, %v478_v35  ;;  %v492_v41 = vmul.f32 %v488_v28, %v479_v36 }
 0x1f3   : > { %796 = vmatpush1.bf16.msra.mxu1 %v795_v26  ;;  %v494_v22 = vpop.permute.xlu1 %493 }
 0x1f4   : > { %v496_v21 = vpop.permute.xlu0 %495 }
 0x1f5   : > { %v498_v37 = vsel %vm497_vm7, %v494_v22, %v496_v21  ;;  %v499_v38 = vsel %vm497_vm7, %v496_v21, %v494_v22 }
 0x1f6   : > { %v511_v42 = vmul.f32 %v504_v31, %v498_v37  ;;  %v512_v43 = vmul.f32 %v508_v33, %v499_v38 }
 0x1f7   : > { %v514_v44 = vpop.permute.xlu1 %513 }
 0x1f8   : > { %v516_v45 = vpop.permute.xlu0 %515  ;;  %v797_v46 = vpack.c.bf16 %v512_v43, %v492_v41  ;;  %v799_v47 = vpack.c.bf16 %v511_v42, %v491_v40 }
 0x1f9   : > { %v519_v49 = vsel %vm517_vm8, %v516_v45, %v514_v44  ;;  %v518_v50 = vsel %vm517_vm8, %v514_v44, %v516_v45 }
 0x1fa   : > { %v532_v51 = vmul.f32 %v528_v39, %v519_v49  ;;  %798 = vmatprep.subr.bf16.mxu1 %v797_v46  ;;  %v531_v52 = vmul.f32 %v524_v48, %v518_v50 }
 0x1fb   : > { %800 = vmatpush1.bf16.msra.mxu1 %v799_v47 }
 0x1fc   : > { %559 = vmatprep.subr.mxu1 %v532_v51 }
 0x1ff   : > { %560 = vmatpush1.msra.mxu1 %v531_v52 }
 0x200   : > { %781 = vmatmul.mubr.msk.f32.vlgmr.msra.gmra.mrb[0].mxu1 %vm539_vm9, %v533_v29 }
 0x208   : > { %v619_v32 = vpop.permute.xlu1 %618 }
 0x209   : > { %v622_v54 = vmul.f32 %v619_v32, %v905_v7  ;;  %v621_v30 = vmul.f32 %v619_v32, %v903_v6  ;;  %v537_v55 = vpop.permute.xlu0 %536  ;;  %v632_v6 = vld [vmem:[%s1021_s5] sm:$0xff] }
 0x20c   : > { %v626_v53 = vpop.permute.xlu1 %625 }
 0x20d   : > { %v629_v56 = vadd.f32 %v626_v53, %v622_v54  ;;  %v628_v58 = vadd.f32 %v626_v53, %v621_v30  ;;  %v636_v7 = vpop.permute.xlu0 %635 }
 0x20f   : > { %v631_v63 = vmax.f32 %v629_v56, 0.0  ;;  %v630_v1 = vmax.f32 %v628_v58, 0.0 }
 0x2d3   : > { %v609_v57 = vpop.f32.mrb[0].mxu1 }
 0x2d4   : > { %v610_v59 = vadd.f32 %v609_v57, %v537_v55  ;;  %v611_v60 = vpop.f32.mrb[1].mxu1 }
 0x2d5   : > { %v612_v61 = vadd.f32 %v611_v60, %v537_v55 }
 0x2d6   : > { %v614_v62 = vmax.f32 %v610_v59, 0.0 }
 0x2d7   : > { %v615_v0 = vmax.f32 %v612_v61, 0.0 }
 0x2d8   : > { %v803_v3 = vpack.c.bf16 %v630_v1, %v614_v62 }
 0x2d9   : > { %v801_v2 = vpack.c.bf16 %v631_v63, %v615_v0 }
 0x2db   : > { %802 = vmatprep.subr.bf16.mxu0 %v801_v2 }
 0x2dc   : > { %804 = vmatpush1.bf16.msra.mxu0 %v803_v3 }
 0x2df   : > { %782 = vmatmul.mubr.msk.f32.vlgmr.msra.gmra.mrb[2].mxu0 %vm638_vm10, %v632_v6 }
 0x3b2   : > { %v708_v4 = vpop.f32.mrb[2].mxu0 }
 0x3b3   : > { %v709_v5 = vadd.f32 %v708_v4, %v636_v7  ;;  %v710_v8 = vpop.f32.mrb[3].mxu0 }
 0x3b4   : > { %v711_v9 = vadd.f32 %v710_v8, %v636_v7 }
 0x3b5   : > { %713 = vst [vmem:[%s253_s8] sm:$0xff] %v709_v5 }
 0x3b6   : > { %714 = vst [vmem:[%s253_s8 + $0x8] sm:$0xff] %v711_v9 }
 0x3b7 PF: > { %s16_s21 = sadd.s32 1, %s831_s21  }
 0x3b8   : > { %p13_p4 = scmp.ge.s32.totalorder %s16_s21, 4  }
 0x3ba   :  { %15 = sbr.rel (!%p13_p4) target bundleno = 1 (0x1), region = 74 }

</bundles_post_ra>
